<compile_context>
chip_gen: v7x
topology: tpu7x:2x2x1
jax: 0.10.0
libtpu: 0.0.40
codegen_flags: <defaults>
</compile_context>

<pallas_src>
import functools
import math

import jax
import jax.numpy as jnp
from jax.experimental import pallas as pl
from jax.experimental.pallas import tpu as pltpu


def _degree_of_coeff(lmax):
    # l(s) for s in [0, (lmax+1)^2): degree l occupies 2l+1 consecutive coefficients.
    return [l for l in range(lmax + 1) for _ in range(2 * l + 1)]


def _silu(x):
    return x * (1.0 / (1.0 + jnp.exp(-x)))


# ---------------------------------------------------------------------------
# Kernel 1: gating linear (+SiLU) and SO3_LinearV2 #1 (per-degree weights).
# Layout: channels on sublanes, nodes on lanes.
# ---------------------------------------------------------------------------
def _lin1_gate_kernel(x_ref, wg_ref, bg_ref, w1_ref, b1_ref, h_ref, g_ref, *, lmax):
    # x_ref: (S, Cin, TN)  wg_ref: (H, Cin)  bg_ref: (H, 1)
    # w1_ref: (lmax+1, H, Cin)  b1_ref: (H, 1)
    # h_ref: (S, H, TN)    g_ref: (H, TN)
    x0 = x_ref[0].astype(jnp.float32)                                   # (Cin, TN)

    gp = jnp.dot(wg_ref[...].astype(jnp.float32), x0,
                 preferred_element_type=jnp.float32)
    gp = gp + bg_ref[...].astype(jnp.float32)                           # (H, TN)
    g_ref[...] = _silu(gp).astype(g_ref.dtype)

    b1 = b1_ref[...].astype(jnp.float32)                                # (H, 1)
    for s, l in enumerate(_degree_of_coeff(lmax)):
        xs = x0 if s == 0 else x_ref[s].astype(jnp.float32)             # (Cin, TN)
        hs = jnp.dot(w1_ref[l].astype(jnp.float32), xs,
                     preferred_element_type=jnp.float32)                # (H, TN)
        if s == 0:
            hs = hs + b1
        h_ref[s] = hs.astype(h_ref.dtype)


# ---------------------------------------------------------------------------
# Kernel 2: S2 activation (to-grid matmul, SiLU, from-grid matmul) on a flat
# (S, H*N) slab — every column is an independent (node, hidden-channel) pair.
# ---------------------------------------------------------------------------
def _s2_grid_kernel(h_ref, tg_ref, fgt_ref, y_ref):
    # h_ref: (S, TM)  tg_ref: (G, S)  fgt_ref: (S, G)  y_ref: (S, TM)
    xg = jnp.dot(tg_ref[...].astype(jnp.float32),
                 h_ref[...].astype(jnp.float32),
                 preferred_element_type=jnp.float32)                    # (G, TM)
    xg = _silu(xg)
    y = jnp.dot(fgt_ref[...].astype(jnp.float32), xg,
                preferred_element_type=jnp.float32)                     # (S, TM)
    y_ref[...] = y.astype(y_ref.dtype)


# ---------------------------------------------------------------------------
# Kernel 3: assemble the separable activation (scalar path on s=0) and apply
# SO3_LinearV2 #2.
# ---------------------------------------------------------------------------
def _lin2_kernel(y_ref, g_ref, w2_ref, b2_ref, o_ref, *, lmax):
    # y_ref: (S, H, TN)  g_ref: (H, TN)  w2_ref: (lmax+1, Cout, H)
    # b2_ref: (Cout, 1)  o_ref: (S, Cout, TN)
    out0 = jnp.dot(w2_ref[0].astype(jnp.float32),
                   g_ref[...].astype(jnp.float32),
                   preferred_element_type=jnp.float32)                  # (Cout, TN)
    out0 = out0 + b2_ref[...].astype(jnp.float32)
    o_ref[0] = out0.astype(o_ref.dtype)

    degrees = _degree_of_coeff(lmax)
    for s in range(1, len(degrees)):
        ys = y_ref[s].astype(jnp.float32)                               # (H, TN)
        os_ = jnp.dot(w2_ref[degrees[s]].astype(jnp.float32), ys,
                      preferred_element_type=jnp.float32)               # (Cout, TN)
        o_ref[s] = os_.astype(o_ref.dtype)


# ---------------------------------------------------------------------------
# Wrapper
# ---------------------------------------------------------------------------
def feedforward_network(x, wg, bg, w1, b1, to_grid_mat, from_grid_mat, w2, b2, *,
                        lmax, tile_n=256, vmem_limit_bytes=48 * 1024 * 1024):
    """FeedForwardNetwork forward (use_sep_s2_act=True / no gate act / no grid MLP).

    x             : (N, S, Cin) node embedding, S = (lmax+1)**2
    wg, bg        : (H, Cin), (H,)            gating_linear
    w1, b1        : (lmax+1, H, Cin), (H,)    so3_linear_1
    to_grid_mat   : (Gb, Ga, S)               SO3_grid to-grid matrix
    from_grid_mat : (Gb, Ga, S)               SO3_grid from-grid matrix
    w2, b2        : (lmax+1, Cout, H), (Cout,) so3_linear_2
    returns       : (N, S, Cout)
    """
    N, S, Cin = x.shape
    assert S == (lmax + 1) ** 2
    H = w1.shape[1]
    Cout = w2.shape[1]
    dtype = x.dtype

    # Pad the node dim to a multiple of the tile (instead of asserting N % tile_n).
    n_tiles = pl.cdiv(N, tile_n)
    Np = n_tiles * tile_n
    if Np != N:
        x = jnp.pad(x, ((0, Np - N), (0, 0), (0, 0)))

    # Lane-dense node-major layout for the kernels: (S, C, N).
    x_t = jnp.transpose(x, (1, 2, 0))                       # (S, Cin, Np)

    tg = to_grid_mat.reshape(-1, S).astype(dtype)           # (G, S)
    fgt = from_grid_mat.reshape(-1, S).T.astype(dtype)      # (S, G)
    G = tg.shape[0]

    bg2 = bg.reshape(H, 1).astype(dtype)
    b12 = b1.reshape(H, 1).astype(dtype)
    b22 = b2.reshape(Cout, 1).astype(dtype)

    cparams = pltpu.CompilerParams(
        dimension_semantics=("parallel",),
        vmem_limit_bytes=vmem_limit_bytes)

    # --- Stage 1: gating + SO3 linear 1 ------------------------------------
    k1 = functools.partial(_lin1_gate_kernel, lmax=lmax)
    h_t, g_t = pl.pallas_call(
        k1,
        out_shape=(jax.ShapeDtypeStruct((S, H, Np), dtype),
                   jax.ShapeDtypeStruct((H, Np), dtype)),
        grid_spec=pltpu.PrefetchScalarGridSpec(
            num_scalar_prefetch=0,
            grid=(n_tiles,),
            in_specs=[
                pl.BlockSpec((S, Cin, tile_n), lambda i: (0, 0, i)),
                pl.BlockSpec((H, Cin), lambda i: (0, 0)),
                pl.BlockSpec((H, 1), lambda i: (0, 0)),
                pl.BlockSpec((lmax + 1, H, Cin), lambda i: (0, 0, 0)),
                pl.BlockSpec((H, 1), lambda i: (0, 0)),
            ],
            out_specs=[
                pl.BlockSpec((S, H, tile_n), lambda i: (0, 0, i)),
                pl.BlockSpec((H, tile_n), lambda i: (0, i)),
            ]),
        compiler_params=cparams,
    )(x_t, wg.astype(dtype), bg2, w1.astype(dtype), b12)

    # --- Stage 2: S2 activation on a flat (S, H*Np) slab --------------------
    h2 = h_t.reshape(S, H * Np)        # free reshape at the XLA level
    tile_m = H * tile_n                # tile_m always divides H*Np
    y2 = pl.pallas_call(
        _s2_grid_kernel,
        out_shape=jax.ShapeDtypeStruct((S, H * Np), dtype),
        grid_spec=pltpu.PrefetchScalarGridSpec(
            num_scalar_prefetch=0,
            grid=(n_tiles,),
            in_specs=[
                pl.BlockSpec((S, tile_m), lambda i: (0, i)),
                pl.BlockSpec((G, S), lambda i: (0, 0)),
                pl.BlockSpec((S, G), lambda i: (0, 0)),
            ],
            out_specs=pl.BlockSpec((S, tile_m), lambda i: (0, i))),
        compiler_params=cparams,
    )(h2, tg, fgt)
    y_t = y2.reshape(S, H, Np)

    # --- Stage 3: separable-activation assembly + SO3 linear 2 --------------
    k3 = functools.partial(_lin2_kernel, lmax=lmax)
    out_t = pl.pallas_call(
        k3,
        out_shape=jax.ShapeDtypeStruct((S, Cout, Np), dtype),
        grid_spec=pltpu.PrefetchScalarGridSpec(
            num_scalar_prefetch=0,
            grid=(n_tiles,),
            in_specs=[
                pl.BlockSpec((S, H, tile_n), lambda i: (0, 0, i)),
                pl.BlockSpec((H, tile_n), lambda i: (0, i)),
                pl.BlockSpec((lmax + 1, Cout, H), lambda i: (0, 0, 0)),
                pl.BlockSpec((Cout, 1), lambda i: (0, 0)),
            ],
            out_specs=pl.BlockSpec((S, Cout, tile_n), lambda i: (0, 0, i))),
        compiler_params=cparams,
    )(y_t, g_t, w2.astype(dtype), b22)

    out = jnp.transpose(out_t, (2, 0, 1))                   # (Np, S, Cout)
    return out[:N]


# ---------------------------------------------------------------------------
# Pure-JAX reference mirroring the PyTorch forward (default config path).
# ---------------------------------------------------------------------------
def _ffn_reference(x, wg, bg, w1, b1, to_grid_mat, from_grid_mat, w2, b2, *, lmax):
    N, S, Cin = x.shape
    expand = jnp.array(_degree_of_coeff(lmax))
    # gating_linear on the l=0 scalars of the *input* embedding
    g = x[:, 0, :] @ wg.T + bg                              # (N, H)
    # so3_linear_1
    w1e = w1[expand]                                        # (S, H, Cin)
    h = jnp.einsum('nsi,soi->nso', x, w1e)
    h = h.at[:, 0, :].add(b1)
    # SeparableS2Activation
    scalars = jax.nn.silu(g)[:, None, :]                    # (N, 1, H)
    tg = to_grid_mat.reshape(-1, S)
    fg = from_grid_mat.reshape(-1, S)
    xg = jnp.einsum('gs,nsc->ngc', tg, h)
    xg = jax.nn.silu(xg)
    y = jnp.einsum('gs,ngc->nsc', fg, xg)
    act = jnp.concatenate([scalars, y[:, 1:, :]], axis=1)   # (N, S, H)
    # so3_linear_2
    w2e = w2[expand]                                        # (S, Cout, H)
    out = jnp.einsum('nsi,soi->nso', act, w2e)
    out = out.at[:, 0, :].add(b2)
    return out


if __name__ == "__main__":
    lmax = 2
    S = (lmax + 1) ** 2      # 9
    Cin = 16                 # sphere_channels
    H = 32                   # hidden_channels
    Cout = 16                # output_channels
    N = 384                  # nodes (exercises multi-step grid + padding, tile_n=256)
    Gb, Ga = 6, 7            # SO3 grid resolution (stand-in), G = 42

    key = jax.random.PRNGKey(0)
    ks = jax.random.split(key, 8)
    x = jax.random.normal(ks[0], (N, S, Cin), dtype=jnp.float32)

    bound1 = 1.0 / math.sqrt(Cin)
    wg = jax.random.uniform(ks[1], (H, Cin), jnp.float32, -bound1, bound1)
    bg = 0.1 * jax.random.normal(ks[2], (H,), jnp.float32)
    w1 = jax.random.uniform(ks[3], (lmax + 1, H, Cin), jnp.float32, -bound1, bound1)
    b1 = 0.1 * jax.random.normal(ks[4], (H,), jnp.float32)
    bound2 = 1.0 / math.sqrt(H)
    w2 = jax.random.uniform(ks[5], (lmax + 1, Cout, H), jnp.float32, -bound2, bound2)
    b2 = 0.1 * jax.random.normal(ks[6], (Cout,), jnp.float32)

    # TODO(synk): real to_grid/from_grid matrices come from e3nn's SO3_grid
    # (ToS2Grid/FromS2Grid); deterministic stand-ins are used here since the
    # kernels treat them as constant dense inputs.
    kg1, kg2 = jax.random.split(ks[7])
    to_grid_mat = jax.random.normal(kg1, (Gb, Ga, S), jnp.float32) / math.sqrt(S)
    from_grid_mat = jax.random.normal(kg2, (Gb, Ga, S), jnp.float32) / math.sqrt(Gb * Ga)

    out = feedforward_network(x, wg, bg, w1, b1, to_grid_mat, from_grid_mat,
                              w2, b2, lmax=lmax, tile_n=256)
    out = jax.block_until_ready(out)

    ref = _ffn_reference(x, wg, bg, w1, b1, to_grid_mat, from_grid_mat,
                         w2, b2, lmax=lmax)
    assert out.shape == (N, S, Cout)
    max_err = float(jnp.max(jnp.abs(out - ref)))
    # tolerance covers possible MXU bf16-pass precision differences vs XLA
    assert jnp.allclose(out, ref, atol=2e-2, rtol=2e-2), f"mismatch: {max_err}"

    print("KERNEL_OK")
</pallas_src>

<mosaic_0001>
module attributes {stable_mosaic.version = 11 : i64} {
  func.func @_lin1_gate_kernel(%arg0: i32, %arg1: memref<9x16x256xf32, #tpu.memory_space<vmem>>, %arg2: memref<32x16xf32, #tpu.memory_space<vmem>>, %arg3: memref<32x1xf32, #tpu.memory_space<vmem>>, %arg4: memref<3x32x16xf32, #tpu.memory_space<vmem>>, %arg5: memref<32x1xf32, #tpu.memory_space<vmem>>, %arg6: memref<9x32x256xf32, #tpu.memory_space<vmem>>, %arg7: memref<32x256xf32, #tpu.memory_space<vmem>>) attributes {dimension_semantics = [#tpu.dimension_semantics<parallel>], iteration_bounds = array<i64: 2>, scalar_prefetch = 0 : i64, scratch_operands = 0 : i64, tpu.core_type = #tpu.core_type<tc>, window_params = [{transform_indices = @transform_0, window_bounds = array<i64: 9, 16, 256>}, {pipeline_mode = #tpu.pipeline_mode<synchronous>, transform_indices = @transform_1, window_bounds = array<i64: 32, 16>}, {pipeline_mode = #tpu.pipeline_mode<synchronous>, transform_indices = @transform_2, window_bounds = array<i64: 32, 1>}, {pipeline_mode = #tpu.pipeline_mode<synchronous>, transform_indices = @transform_3, window_bounds = array<i64: 3, 32, 16>}, {pipeline_mode = #tpu.pipeline_mode<synchronous>, transform_indices = @transform_4, window_bounds = array<i64: 32, 1>}, {transform_indices = @transform_5, window_bounds = array<i64: 9, 32, 256>}, {transform_indices = @transform_6, window_bounds = array<i64: 32, 256>}]} {
    %c0 = arith.constant 0 : index
    %c0_0 = arith.constant 0 : index
    %c0_1 = arith.constant 0 : index
    %0 = vector.load %arg1[%c0, %c0_0, %c0_1] : memref<9x16x256xf32, #tpu.memory_space<vmem>>, vector<1x16x256xf32>
    %1 = vector.shape_cast %0 : vector<1x16x256xf32> to vector<16x256xf32>
    %c0_2 = arith.constant 0 : index
    %c0_3 = arith.constant 0 : index
    %2 = vector.load %arg2[%c0_2, %c0_3] : memref<32x16xf32, #tpu.memory_space<vmem>>, vector<32x16xf32>
    %cst = arith.constant dense<0.000000e+00> : vector<32x256xf32>
    %3 = tpu.matmul %2, %1, %cst {dimension_numbers = #tpu.dot_dimension_numbers<[1], [0], [0], [1], [0, 0, 1, 1], [], []>} : vector<32x16xf32>, vector<16x256xf32>, vector<32x256xf32> -> vector<32x256xf32>
    %c0_4 = arith.constant 0 : index
    %c0_5 = arith.constant 0 : index
    %4 = vector.load %arg3[%c0_4, %c0_5] : memref<32x1xf32, #tpu.memory_space<vmem>>, vector<32x1xf32>
    %5 = vector.broadcast %4 : vector<32x1xf32> to vector<32x256xf32>
    %6 = arith.addf %3, %5 : vector<32x256xf32>
    %cst_6 = arith.constant 0.000000e+00 : f32
    %7 = vector.broadcast %cst_6 : f32 to vector<32x256xf32>
    %8 = arith.subf %7, %6 : vector<32x256xf32>
    %9 = math.exp %8 : vector<32x256xf32>
    %cst_7 = arith.constant 1.000000e+00 : f32
    %10 = vector.broadcast %cst_7 : f32 to vector<32x256xf32>
    %11 = arith.addf %10, %9 : vector<32x256xf32>
    %cst_8 = arith.constant 1.000000e+00 : f32
    %12 = vector.broadcast %cst_8 : f32 to vector<32x256xf32>
    %13 = arith.divf %12, %11 : vector<32x256xf32>
    %14 = arith.mulf %6, %13 : vector<32x256xf32>
    %c0_9 = arith.constant 0 : index
    %c0_10 = arith.constant 0 : index
    %15 = vector.load %arg7[%c0_9, %c0_10] : memref<32x256xf32, #tpu.memory_space<vmem>>, vector<32x256xf32>
    tpu.vector_store %arg7[%c0_9, %c0_10], %14 {strides = array<i32>} : memref<32x256xf32, #tpu.memory_space<vmem>>, vector<32x256xf32>,
    %c0_11 = arith.constant 0 : index
    %c0_12 = arith.constant 0 : index
    %16 = vector.load %arg5[%c0_11, %c0_12] : memref<32x1xf32, #tpu.memory_space<vmem>>, vector<32x1xf32>
    %c0_13 = arith.constant 0 : index
    %c0_14 = arith.constant 0 : index
    %c0_15 = arith.constant 0 : index
    %17 = vector.load %arg4[%c0_13, %c0_14, %c0_15] : memref<3x32x16xf32, #tpu.memory_space<vmem>>, vector<1x32x16xf32>
    %18 = vector.shape_cast %17 : vector<1x32x16xf32> to vector<32x16xf32>
    %cst_16 = arith.constant dense<0.000000e+00> : vector<32x256xf32>
    %19 = tpu.matmul %18, %1, %cst_16 {dimension_numbers = #tpu.dot_dimension_numbers<[1], [0], [0], [1], [0, 0, 1, 1], [], []>} : vector<32x16xf32>, vector<16x256xf32>, vector<32x256xf32> -> vector<32x256xf32>
    %20 = vector.broadcast %16 : vector<32x1xf32> to vector<32x256xf32>
    %21 = arith.addf %19, %20 : vector<32x256xf32>
    %c0_17 = arith.constant 0 : index
    %c0_18 = arith.constant 0 : index
    %c0_19 = arith.constant 0 : index
    %22 = vector.load %arg6[%c0_17, %c0_18, %c0_19] : memref<9x32x256xf32, #tpu.memory_space<vmem>>, vector<1x32x256xf32>
    %23 = vector.shape_cast %22 : vector<1x32x256xf32> to vector<32x256xf32>
    %24 = vector.shape_cast %21 : vector<32x256xf32> to vector<1x32x256xf32>
    tpu.vector_store %arg6[%c0_17, %c0_18, %c0_19], %24 {strides = array<i32>} : memref<9x32x256xf32, #tpu.memory_space<vmem>>, vector<1x32x256xf32>,
    %c1 = arith.constant 1 : index
    %c0_20 = arith.constant 0 : index
    %c0_21 = arith.constant 0 : index
    %25 = vector.load %arg1[%c1, %c0_20, %c0_21] : memref<9x16x256xf32, #tpu.memory_space<vmem>>, vector<1x16x256xf32>
    %26 = vector.shape_cast %25 : vector<1x16x256xf32> to vector<16x256xf32>
    %c1_22 = arith.constant 1 : index
    %c0_23 = arith.constant 0 : index
    %c0_24 = arith.constant 0 : index
    %27 = vector.load %arg4[%c1_22, %c0_23, %c0_24] : memref<3x32x16xf32, #tpu.memory_space<vmem>>, vector<1x32x16xf32>
    %28 = vector.shape_cast %27 : vector<1x32x16xf32> to vector<32x16xf32>
    %cst_25 = arith.constant dense<0.000000e+00> : vector<32x256xf32>
    %29 = tpu.matmul %28, %26, %cst_25 {dimension_numbers = #tpu.dot_dimension_numbers<[1], [0], [0], [1], [0, 0, 1, 1], [], []>} : vector<32x16xf32>, vector<16x256xf32>, vector<32x256xf32> -> vector<32x256xf32>
    %c1_26 = arith.constant 1 : index
    %c0_27 = arith.constant 0 : index
    %c0_28 = arith.constant 0 : index
    %30 = vector.load %arg6[%c1_26, %c0_27, %c0_28] : memref<9x32x256xf32, #tpu.memory_space<vmem>>, vector<1x32x256xf32>
    %31 = vector.shape_cast %30 : vector<1x32x256xf32> to vector<32x256xf32>
    %32 = vector.shape_cast %29 : vector<32x256xf32> to vector<1x32x256xf32>
    tpu.vector_store %arg6[%c1_26, %c0_27, %c0_28], %32 {strides = array<i32>} : memref<9x32x256xf32, #tpu.memory_space<vmem>>, vector<1x32x256xf32>,
    %c2 = arith.constant 2 : index
    %c0_29 = arith.constant 0 : index
    %c0_30 = arith.constant 0 : index
    %33 = vector.load %arg1[%c2, %c0_29, %c0_30] : memref<9x16x256xf32, #tpu.memory_space<vmem>>, vector<1x16x256xf32>
    %34 = vector.shape_cast %33 : vector<1x16x256xf32> to vector<16x256xf32>
    %c1_31 = arith.constant 1 : index
    %c0_32 = arith.constant 0 : index
    %c0_33 = arith.constant 0 : index
    %35 = vector.load %arg4[%c1_31, %c0_32, %c0_33] : memref<3x32x16xf32, #tpu.memory_space<vmem>>, vector<1x32x16xf32>
    %36 = vector.shape_cast %35 : vector<1x32x16xf32> to vector<32x16xf32>
    %cst_34 = arith.constant dense<0.000000e+00> : vector<32x256xf32>
    %37 = tpu.matmul %36, %34, %cst_34 {dimension_numbers = #tpu.dot_dimension_numbers<[1], [0], [0], [1], [0, 0, 1, 1], [], []>} : vector<32x16xf32>, vector<16x256xf32>, vector<32x256xf32> -> vector<32x256xf32>
    %c2_35 = arith.constant 2 : index
    %c0_36 = arith.constant 0 : index
    %c0_37 = arith.constant 0 : index
    %38 = vector.load %arg6[%c2_35, %c0_36, %c0_37] : memref<9x32x256xf32, #tpu.memory_space<vmem>>, vector<1x32x256xf32>
    %39 = vector.shape_cast %38 : vector<1x32x256xf32> to vector<32x256xf32>
    %40 = vector.shape_cast %37 : vector<32x256xf32> to vector<1x32x256xf32>
    tpu.vector_store %arg6[%c2_35, %c0_36, %c0_37], %40 {strides = array<i32>} : memref<9x32x256xf32, #tpu.memory_space<vmem>>, vector<1x32x256xf32>,
    %c3 = arith.constant 3 : index
    %c0_38 = arith.constant 0 : index
    %c0_39 = arith.constant 0 : index
    %41 = vector.load %arg1[%c3, %c0_38, %c0_39] : memref<9x16x256xf32, #tpu.memory_space<vmem>>, vector<1x16x256xf32>
    %42 = vector.shape_cast %41 : vector<1x16x256xf32> to vector<16x256xf32>
    %c1_40 = arith.constant 1 : index
    %c0_41 = arith.constant 0 : index
    %c0_42 = arith.constant 0 : index
    %43 = vector.load %arg4[%c1_40, %c0_41, %c0_42] : memref<3x32x16xf32, #tpu.memory_space<vmem>>, vector<1x32x16xf32>
    %44 = vector.shape_cast %43 : vector<1x32x16xf32> to vector<32x16xf32>
    %cst_43 = arith.constant dense<0.000000e+00> : vector<32x256xf32>
    %45 = tpu.matmul %44, %42, %cst_43 {dimension_numbers = #tpu.dot_dimension_numbers<[1], [0], [0], [1], [0, 0, 1, 1], [], []>} : vector<32x16xf32>, vector<16x256xf32>, vector<32x256xf32> -> vector<32x256xf32>
    %c3_44 = arith.constant 3 : index
    %c0_45 = arith.constant 0 : index
    %c0_46 = arith.constant 0 : index
    %46 = vector.load %arg6[%c3_44, %c0_45, %c0_46] : memref<9x32x256xf32, #tpu.memory_space<vmem>>, vector<1x32x256xf32>
    %47 = vector.shape_cast %46 : vector<1x32x256xf32> to vector<32x256xf32>
    %48 = vector.shape_cast %45 : vector<32x256xf32> to vector<1x32x256xf32>
    tpu.vector_store %arg6[%c3_44, %c0_45, %c0_46], %48 {strides = array<i32>} : memref<9x32x256xf32, #tpu.memory_space<vmem>>, vector<1x32x256xf32>,
    %c4 = arith.constant 4 : index
    %c0_47 = arith.constant 0 : index
    %c0_48 = arith.constant 0 : index
    %49 = vector.load %arg1[%c4, %c0_47, %c0_48] : memref<9x16x256xf32, #tpu.memory_space<vmem>>, vector<1x16x256xf32>
    %50 = vector.shape_cast %49 : vector<1x16x256xf32> to vector<16x256xf32>
    %c2_49 = arith.constant 2 : index
    %c0_50 = arith.constant 0 : index
    %c0_51 = arith.constant 0 : index
    %51 = vector.load %arg4[%c2_49, %c0_50, %c0_51] : memref<3x32x16xf32, #tpu.memory_space<vmem>>, vector<1x32x16xf32>
    %52 = vector.shape_cast %51 : vector<1x32x16xf32> to vector<32x16xf32>
    %cst_52 = arith.constant dense<0.000000e+00> : vector<32x256xf32>
    %53 = tpu.matmul %52, %50, %cst_52 {dimension_numbers = #tpu.dot_dimension_numbers<[1], [0], [0], [1], [0, 0, 1, 1], [], []>} : vector<32x16xf32>, vector<16x256xf32>, vector<32x256xf32> -> vector<32x256xf32>
    %c4_53 = arith.constant 4 : index
    %c0_54 = arith.constant 0 : index
    %c0_55 = arith.constant 0 : index
    %54 = vector.load %arg6[%c4_53, %c0_54, %c0_55] : memref<9x32x256xf32, #tpu.memory_space<vmem>>, vector<1x32x256xf32>
    %55 = vector.shape_cast %54 : vector<1x32x256xf32> to vector<32x256xf32>
    %56 = vector.shape_cast %53 : vector<32x256xf32> to vector<1x32x256xf32>
    tpu.vector_store %arg6[%c4_53, %c0_54, %c0_55], %56 {strides = array<i32>} : memref<9x32x256xf32, #tpu.memory_space<vmem>>, vector<1x32x256xf32>,
    %c5 = arith.constant 5 : index
    %c0_56 = arith.constant 0 : index
    %c0_57 = arith.constant 0 : index
    %57 = vector.load %arg1[%c5, %c0_56, %c0_57] : memref<9x16x256xf32, #tpu.memory_space<vmem>>, vector<1x16x256xf32>
    %58 = vector.shape_cast %57 : vector<1x16x256xf32> to vector<16x256xf32>
    %c2_58 = arith.constant 2 : index
    %c0_59 = arith.constant 0 : index
    %c0_60 = arith.constant 0 : index
    %59 = vector.load %arg4[%c2_58, %c0_59, %c0_60] : memref<3x32x16xf32, #tpu.memory_space<vmem>>, vector<1x32x16xf32>
    %60 = vector.shape_cast %59 : vector<1x32x16xf32> to vector<32x16xf32>
    %cst_61 = arith.constant dense<0.000000e+00> : vector<32x256xf32>
    %61 = tpu.matmul %60, %58, %cst_61 {dimension_numbers = #tpu.dot_dimension_numbers<[1], [0], [0], [1], [0, 0, 1, 1], [], []>} : vector<32x16xf32>, vector<16x256xf32>, vector<32x256xf32> -> vector<32x256xf32>
    %c5_62 = arith.constant 5 : index
    %c0_63 = arith.constant 0 : index
    %c0_64 = arith.constant 0 : index
    %62 = vector.load %arg6[%c5_62, %c0_63, %c0_64] : memref<9x32x256xf32, #tpu.memory_space<vmem>>, vector<1x32x256xf32>
    %63 = vector.shape_cast %62 : vector<1x32x256xf32> to vector<32x256xf32>
    %64 = vector.shape_cast %61 : vector<32x256xf32> to vector<1x32x256xf32>
    tpu.vector_store %arg6[%c5_62, %c0_63, %c0_64], %64 {strides = array<i32>} : memref<9x32x256xf32, #tpu.memory_space<vmem>>, vector<1x32x256xf32>,
    %c6 = arith.constant 6 : index
    %c0_65 = arith.constant 0 : index
    %c0_66 = arith.constant 0 : index
    %65 = vector.load %arg1[%c6, %c0_65, %c0_66] : memref<9x16x256xf32, #tpu.memory_space<vmem>>, vector<1x16x256xf32>
    %66 = vector.shape_cast %65 : vector<1x16x256xf32> to vector<16x256xf32>
    %c2_67 = arith.constant 2 : index
    %c0_68 = arith.constant 0 : index
    %c0_69 = arith.constant 0 : index
    %67 = vector.load %arg4[%c2_67, %c0_68, %c0_69] : memref<3x32x16xf32, #tpu.memory_space<vmem>>, vector<1x32x16xf32>
    %68 = vector.shape_cast %67 : vector<1x32x16xf32> to vector<32x16xf32>
    %cst_70 = arith.constant dense<0.000000e+00> : vector<32x256xf32>
    %69 = tpu.matmul %68, %66, %cst_70 {dimension_numbers = #tpu.dot_dimension_numbers<[1], [0], [0], [1], [0, 0, 1, 1], [], []>} : vector<32x16xf32>, vector<16x256xf32>, vector<32x256xf32> -> vector<32x256xf32>
    %c6_71 = arith.constant 6 : index
    %c0_72 = arith.constant 0 : index
    %c0_73 = arith.constant 0 : index
    %70 = vector.load %arg6[%c6_71, %c0_72, %c0_73] : memref<9x32x256xf32, #tpu.memory_space<vmem>>, vector<1x32x256xf32>
    %71 = vector.shape_cast %70 : vector<1x32x256xf32> to vector<32x256xf32>
    %72 = vector.shape_cast %69 : vector<32x256xf32> to vector<1x32x256xf32>
    tpu.vector_store %arg6[%c6_71, %c0_72, %c0_73], %72 {strides = array<i32>} : memref<9x32x256xf32, #tpu.memory_space<vmem>>, vector<1x32x256xf32>,
    %c7 = arith.constant 7 : index
    %c0_74 = arith.constant 0 : index
    %c0_75 = arith.constant 0 : index
    %73 = vector.load %arg1[%c7, %c0_74, %c0_75] : memref<9x16x256xf32, #tpu.memory_space<vmem>>, vector<1x16x256xf32>
    %74 = vector.shape_cast %73 : vector<1x16x256xf32> to vector<16x256xf32>
    %c2_76 = arith.constant 2 : index
    %c0_77 = arith.constant 0 : index
    %c0_78 = arith.constant 0 : index
    %75 = vector.load %arg4[%c2_76, %c0_77, %c0_78] : memref<3x32x16xf32, #tpu.memory_space<vmem>>, vector<1x32x16xf32>
    %76 = vector.shape_cast %75 : vector<1x32x16xf32> to vector<32x16xf32>
    %cst_79 = arith.constant dense<0.000000e+00> : vector<32x256xf32>
    %77 = tpu.matmul %76, %74, %cst_79 {dimension_numbers = #tpu.dot_dimension_numbers<[1], [0], [0], [1], [0, 0, 1, 1], [], []>} : vector<32x16xf32>, vector<16x256xf32>, vector<32x256xf32> -> vector<32x256xf32>
    %c7_80 = arith.constant 7 : index
    %c0_81 = arith.constant 0 : index
    %c0_82 = arith.constant 0 : index
    %78 = vector.load %arg6[%c7_80, %c0_81, %c0_82] : memref<9x32x256xf32, #tpu.memory_space<vmem>>, vector<1x32x256xf32>
    %79 = vector.shape_cast %78 : vector<1x32x256xf32> to vector<32x256xf32>
    %80 = vector.shape_cast %77 : vector<32x256xf32> to vector<1x32x256xf32>
    tpu.vector_store %arg6[%c7_80, %c0_81, %c0_82], %80 {strides = array<i32>} : memref<9x32x256xf32, #tpu.memory_space<vmem>>, vector<1x32x256xf32>,
    %c8 = arith.constant 8 : index
    %c0_83 = arith.constant 0 : index
    %c0_84 = arith.constant 0 : index
    %81 = vector.load %arg1[%c8, %c0_83, %c0_84] : memref<9x16x256xf32, #tpu.memory_space<vmem>>, vector<1x16x256xf32>
    %82 = vector.shape_cast %81 : vector<1x16x256xf32> to vector<16x256xf32>
    %c2_85 = arith.constant 2 : index
    %c0_86 = arith.constant 0 : index
    %c0_87 = arith.constant 0 : index
    %83 = vector.load %arg4[%c2_85, %c0_86, %c0_87] : memref<3x32x16xf32, #tpu.memory_space<vmem>>, vector<1x32x16xf32>
    %84 = vector.shape_cast %83 : vector<1x32x16xf32> to vector<32x16xf32>
    %cst_88 = arith.constant dense<0.000000e+00> : vector<32x256xf32>
    %85 = tpu.matmul %84, %82, %cst_88 {dimension_numbers = #tpu.dot_dimension_numbers<[1], [0], [0], [1], [0, 0, 1, 1], [], []>} : vector<32x16xf32>, vector<16x256xf32>, vector<32x256xf32> -> vector<32x256xf32>
    %c8_89 = arith.constant 8 : index
    %c0_90 = arith.constant 0 : index
    %c0_91 = arith.constant 0 : index
    %86 = vector.load %arg6[%c8_89, %c0_90, %c0_91] : memref<9x32x256xf32, #tpu.memory_space<vmem>>, vector<1x32x256xf32>
    %87 = vector.shape_cast %86 : vector<1x32x256xf32> to vector<32x256xf32>
    %88 = vector.shape_cast %85 : vector<32x256xf32> to vector<1x32x256xf32>
    tpu.vector_store %arg6[%c8_89, %c0_90, %c0_91], %88 {strides = array<i32>} : memref<9x32x256xf32, #tpu.memory_space<vmem>>, vector<1x32x256xf32>,
    return
  }
  func.func @transform_0(%arg0: i32) -> (i32, i32, i32) {
    %c0_i32 = arith.constant 0 : i32
    %c0_i32_0 = arith.constant 0 : i32
    %c0_i32_1 = arith.constant 0 : i32
    return %c0_i32, %c0_i32_0, %arg0 : i32, i32, i32
  }
  func.func @transform_1(%arg0: i32) -> (i32, i32) {
    %c0_i32 = arith.constant 0 : i32
    %c0_i32_0 = arith.constant 0 : i32
    %c0_i32_1 = arith.constant 0 : i32
    return %c0_i32, %c0_i32_0 : i32, i32
  }
  func.func @transform_2(%arg0: i32) -> (i32, i32) {
    %c0_i32 = arith.constant 0 : i32
    %c0_i32_0 = arith.constant 0 : i32
    %c0_i32_1 = arith.constant 0 : i32
    return %c0_i32, %c0_i32_0 : i32, i32
  }
  func.func @transform_3(%arg0: i32) -> (i32, i32, i32) {
    %c0_i32 = arith.constant 0 : i32
    %c0_i32_0 = arith.constant 0 : i32
    %c0_i32_1 = arith.constant 0 : i32
    %c0_i32_2 = arith.constant 0 : i32
    return %c0_i32, %c0_i32_0, %c0_i32_1 : i32, i32, i32
  }
  func.func @transform_4(%arg0: i32) -> (i32, i32) {
    %c0_i32 = arith.constant 0 : i32
    %c0_i32_0 = arith.constant 0 : i32
    %c0_i32_1 = arith.constant 0 : i32
    return %c0_i32, %c0_i32_0 : i32, i32
  }
  func.func @transform_5(%arg0: i32) -> (i32, i32, i32) {
    %c0_i32 = arith.constant 0 : i32
    %c0_i32_0 = arith.constant 0 : i32
    %c0_i32_1 = arith.constant 0 : i32
    return %c0_i32, %c0_i32_0, %arg0 : i32, i32, i32
  }
  func.func @transform_6(%arg0: i32) -> (i32, i32) {
    %c0_i32 = arith.constant 0 : i32
    %c0_i32_0 = arith.constant 0 : i32
    return %c0_i32, %arg0 : i32, i32
  }
}

</mosaic_0001>

<bundles_post_ra>
// kernel: tpu_custom_call.1
= control target key start
LH: loop header
LB: loop body
LE: loop exit
PB: predicated region body
PF: predicated region fallthrough
CT: control target
= control target key end

     0   :  { %12 = vsyncpa [#allocation3], 0  ;;  %s2719_s0 = inlined_call_operand.hbm [shape: f32[9,16,512], index: 0, kind: input, shape index: {}]   ;;  %s2720_s1 = inlined_call_operand.vmem [shape: f32[32,16], index: 1, kind: input, shape index: {}]   ;;  %s2721_s2 = inlined_call_operand.vmem [shape: f32[32,1], index: 2, kind: input, shape index: {}]   ;;  %s2722_s3 = inlined_call_operand.vmem [shape: f32[3,32,16], index: 3, kind: input, shape index: {}]   ;;  %s2723_s4 = inlined_call_operand.vmem [shape: f32[32,1], index: 4, kind: input, shape index: {}]   ;;  %s2724_s5 = inlined_call_operand.hbm [shape: f32[9,32,512], index: 5, kind: output, shape index: {0}]   ;;  %s2725_s6 = inlined_call_operand.hbm [shape: f32[32,512], index: 6, kind: output, shape index: {1}]  }
   0x1   :  { %14 = vsyncpa [#allocation3 + $0x1], 0 }
   0x2   :  { %15 = vsyncpa [#allocation4], 0 }
   0x3   :  { %17 = vsyncpa [#allocation4 + $0x1], 0 }
   0x4   :  { %18 = vsyncpa [#allocation7], 0 }
   0x5   :  { %20 = vsyncpa [#allocation7 + $0x1], 0  ;;  %s2210_s21 = smov 0   ;;  %s2212_s22 = smov 0  }
   0x6   :  { %s2214_s23 = smov 0   ;;  %s2216_s24 = smov 0  }
   0x7 LB: > { %s2231_s25 = sadd.s32 4294967295, %s2162_s24   ;;  %s1713_s26 = sadd.s32 4294967294, %s2162_s24   ;;  %s2162_s24 = sphi %s2216_s24, %s2738_s24   ;;  %s2158_s23 = sphi %s2214_s23, %s2737_s23   ;;  %s2154_s22 = sphi %s2212_s22, %s2736_s22   ;;  %s2150_s21 = sphi %s2210_s21, %s2735_s21  }
   0x8   : > { %s2235_s27 = sadd.s32 1, %s2162_s24   ;;  %s33_s28 = sadd.s32 1, %s2158_s23 }
   0x9   : > { %s30_s29 = ssub.s32 %s2162_s24, %s2235_s27  ;;  %p40_p0 = scmp.ne.s32.totalorder %s2158_s23, %s2154_s22 }
   0xa   : > { %p31_p1 = scmp.eq.s32.totalorder %s30_s29, 0  ;;  %p41_p2 = scmp.eq.s32.totalorder %s2162_s24, 0 }
   0xb   : > { %p46_p3 = scmp.ne.s32.totalorder %s2154_s22, %s2150_s21  ;;  %p47_p4 = scmp.eq.s32.totalorder %s2231_s25, 0 }
   0xc   : > { %s2247_s30 = scalar_select %p31_p1, %s2158_s23, %s33_s28  }
   0xd   : > { %p42_p5 = por %p41_p2, %p40_p0  ;;  %p2249_p6 = por %p47_p4, %p46_p3 }
   0xe   : > { %p154_p7 = scmp.eq.s32.totalorder %s2231_s25, 1  ;;  %p160_p8 = scmp.eq.s32.totalorder %s1713_s26, 1 }
   0xf   : > { %p1958_p10 = scmp.lt.s32.totalorder %s2162_s24, 2  ;;  %s218_s10 = sand.u32 1, %s2158_s23  }
  0x10   : > { %p2256_p11 = por %p154_p7, %p40_p0  ;;  %p2260_p12 = por %p160_p8, %p46_p3 }
  0x11   : > { %s1895_s11 = sshll.u32 %s2162_s24, 8  ;;  %s1938_s12 = smul.u32 288, %s218_s10 }
  0x12   : > { %s2728_s8 = scalar_select %p2256_p11, 1, 0 }
  0x13   : > { %s2729_s9 = scalar_select %p2260_p12, 1, 0 }
  0x14   : > { %s2269_s15 = scalar_lea.hbm %s2719_s0, %s1895_s11  ;;  %p2271_p13 = pnand %p1958_p10, %p42_p5 }
  0x15   : > { %s222_s17 = scalar_lea.vmem [#allocation2], %s1938_s12  ;;  %s2278_s19 = scalar_lea.sflag [#allocation3], %s218_s10 }
  0x16   : > { %s229_s18 = sshll.u32 %s222_s17, 4  ;;  %s2034_s20 = scalar_lea.hbm %s2269_s15, 4608  ;;  %s2275_s18 = int_to_ptr.vmem [resolvable:$true] %s229_s18 }
  0x17   : > { %p2035_p1 = scmp.ne.s32.totalorder %s2269_s15, %s2034_s20  ;;  %p2036_p2 = pneg %p2271_p13 }
  0x18   : > { %s2039_s29 = scalar_lea.hbm %s2719_s0, 9216  ;;  %p2040_p5 = scmp.lt.u32.totalorder %s2269_s15, %s2719_s0 }
  0x19   : > { %p2037_p3 = pnand %p2036_p2, %p2035_p1  ;;  %p2041_p7 = scmp.lt.u32.totalorder %s2039_s29, %s2034_s20 }
  0x1a   : > { %p2043_p10 = scmp.lt.u32.totalorder %s2034_s20, %s2269_s15 }
  0x1b   : > { %p2038_p4 = pneg %p2037_p3  ;;  %p2042_p8 = por %p2041_p7, %p2040_p5 }
  0x1d   : > { %p2044_p9 = por %p2043_p10, %p2042_p8 }
  0x1f   : > { %p2045_p0 = pnand %p2044_p9, %p2038_p4 }
  0x21   : > { %2048 = shalt.err (!%p2045_p0)
}
  0x22   : > { %s2049_s10 = scalar_lea.vmem %s2275_s18, 4608  ;;  %s2164_s13 = smov [#allocation2]  }
  0x23   : > { %p2050_p1 = scmp.ne.s32.totalorder %s2275_s18, %s2049_s10  ;;  %s2054_s14 = sshll.u32 %s2164_s13, 4  ;;  %s2055_s14 = int_to_ptr.vmem [resolvable:$false] %s2054_s14 }
  0x24   : > { %s2056_s17 = scalar_lea.vmem %s2055_s14, 9216  ;;  %p2057_p11 = scmp.lt.s32.totalorder %s2275_s18, %s2055_s14 }
  0x25   : > { %p2052_p3 = pnand %p2050_p1, %p2036_p2  ;;  %p2058_p5 = scmp.lt.s32.totalorder %s2056_s17, %s2049_s10 }
  0x27   : > { %p2053_p12 = pneg %p2052_p3  ;;  %p2059_p7 = por %p2058_p5, %p2057_p11 }
  0x29   : > { %p2060_p8 = pnand %p2059_p7, %p2053_p12 }
  0x2b   : > { %2063 = shalt.err (!%p2060_p8)
}
  0x2c   : > { %s2165_s20 = smov 512   ;;  %s2166_s26 = smov 256  }
  0x2d   : > { %s2167_s28 = smov 16   ;;  %p237_p9 = scmp.lt.s32.totalorder %s2162_s24, 3 }
  0x2e   : > { %1950 = dma.hbm_to_vmem [thread:$0]  (!%p2271_p13), %s2269_s15, 4608, %s2275_s18, %s2278_s19, %s2165_s20, %s2166_s26, %s2167_s28  }
  0x2f   : > { %p2731_p0 = scmp.ge.s32.totalorder %s2162_s24, 1 }
  0x31   : > { %p238_p2 = pnand %p2731_p0, %p237_p9 }
  0x32   : > { %s2310_s29 = sand.u32 (!%p238_p2), 1, %s2154_s22  }
  0x33   : > { %241 = sbr.rel (%p238_p2) target bundleno = 369 (0x171), region = 40  ;;  %s244_s12 = scalar_lea.sflag (!%p238_p2), [#allocation3], %s2310_s29 }
  0x34   : > { %s1939_s11 = smul.u32 (!%p238_p2), 288, %s2310_s29 }
  0x36   : > { %s2314_s10 = scalar_lea.vmem (!%p238_p2), [#allocation2], %s1939_s11 }
  0x3a   : > { %2137 = dma.done.wait (%p2249_p6), %s244_s12, 4608  }
  0x3b   : > { %2139 = vsyncadd (%p2249_p6), %s244_s12, 4294962688  ;;  %v2168_v0 = vmov 0.0   ;;  %v2169_v1 = vmov 0   ;;  %v285_v2 = vld [vmem:[%s2314_s10 + $0x8] sm:$0xff]  ;;  %v287_v3 = vld [vmem:[%s2314_s10 + $0x18] sm:$0xff]  ;;  %vm316_vm0 = vcmask 130048  }
  0x3c   : > { %393 = vmatprep.mubr.f32.mxu0 %v2168_v0  ;;  %586 = vmatprep.mubr.f32.mxu1 %v2168_v0  ;;  %v284_v4 = vld [vmem:[%s2314_s10] sm:$0xff]  ;;  %v1898_v5 = vpack.c.bf16 %v287_v3, %v285_v2  ;;  %v286_v6 = vld [vmem:[%s2314_s10 + $0x10] sm:$0xff]  ;;  %v1729_v9 = vld [vmem:[%s2314_s10 + $0x28] sm:$0xff]  ;;  %s1719_s28 = sshll.u32 %s2310_s29, 6  ;;  %s1896_s7 = sshll.u32 %s2231_s25, 8 }
  0x3d   : > { %2000 = vset.pattern.permute.xlu0 %v2169_v1  ;;  %2001 = vset.pattern.permute.xlu1 %v2169_v1  ;;  %v1900_v7 = vpack.c.bf16 %v286_v6, %v284_v4  ;;  %v288_v8 = vld [vmem:[%s2720_s1] sm:$0xff]  ;;  %v1731_v10 = vld [vmem:[%s2314_s10 + $0x38] sm:$0xff]  ;;  %v1749_v11 = vld [vmem:[%s2314_s10 + $0x48] sm:$0xff]  ;;  %s2562_s11 = scalar_lea.vmem [#allocation6], %s1719_s28  ;;  %s2602_s18 = scalar_lea.hbm %s2725_s6, %s1896_s7 }
  0x3e   : > { %1899 = vmatprep.subr.bf16.mxu0 %v1898_v5  ;;  %1903 = vmatprep.subr.bf16.mxu1 %v1898_v5  ;;  %v1906_v12 = vpack.c.bf16 %v1731_v10, %v1729_v9  ;;  %v1751_v13 = vld [vmem:[%s2314_s10 + $0x58] sm:$0xff]  ;;  %v1728_v14 = vld [vmem:[%s2314_s10 + $0x20] sm:$0xff]  ;;  %v1730_v15 = vld [vmem:[%s2314_s10 + $0x30] sm:$0xff]  ;;  %s1608_s12 = sshll.u32 %s2562_s11, 4  ;;  %s1579_s19 = scalar_lea.sflag [#allocation7], %s2310_s29  ;;  %s2589_s12 = int_to_ptr.vmem [resolvable:$true] %s1608_s12 }
  0x3f   : > { %1901 = vmatpush1.bf16.msra.mxu0 %v1900_v7  ;;  %1905 = vmatpush1.bf16.msra.mxu1 %v1900_v7  ;;  %v486_v16 = vld [vmem:[%s2722_s3] sm:$0xff]  ;;  %v1910_v17 = vpack.c.bf16 %v1751_v13, %v1749_v11  ;;  %v1908_v18 = vpack.c.bf16 %v1730_v15, %v1728_v14  ;;  %v1750_v20 = vld [vmem:[%s2314_s10 + $0x50] sm:$0xff]  ;;  %v1769_v22 = vld [vmem:[%s2314_s10 + $0x68] sm:$0xff]  ;;  %s2064_s13 = scalar_lea.vmem %s2589_s12, 1024  ;;  %p2732_p11 = scmp.ne.s32.totalorder %s2728_s8, 0 }
  0x40   : > { %v1748_v19 = vld [vmem:[%s2314_s10 + $0x40] sm:$0xff]  ;;  %1907 = vmatprep.subr.bf16.mxu0 %v1906_v12  ;;  %v1771_v23 = vld [vmem:[%s2314_s10 + $0x78] sm:$0xff]  ;;  %v1789_v24 = vld [vmem:[%s2314_s10 + $0x88] sm:$0xff]  ;;  %p2065_p6 = scmp.ne.s32.totalorder %s2589_s12, %s2064_s13  ;;  %s2170_s14 = smov [#allocation6]  }
  0x41   : > { %v1912_v21 = vpack.c.bf16 %v1750_v20, %v1748_v19  ;;  %1911 = vmatprep.subr.bf16.mxu1 %v1910_v17  ;;  %v289_v25 = vld [vmem:[%s2720_s1 + $0x8] sm:$0xff]  ;;  %v1914_v27 = vpack.c.bf16 %v1771_v23, %v1769_v22  ;;  %v1791_v28 = vld [vmem:[%s2314_s10 + $0x98] sm:$0xff]  ;;  %v290_v30 = vld [vmem:[%s2720_s1 + $0x10] sm:$0xff]  ;;  %s2068_s17 = sshll.u32 %s2170_s14, 4  ;;  %s2069_s17 = int_to_ptr.vmem [resolvable:$false] %s2068_s17 }
  0x42   : > { %1720 = vmatmul.mubr.msk.f32.vlgmr.msra.gmra.mrb[0].mxu0 %vm316_vm0, %v288_v8  ;;  %1724 = vmatmul.mubr.msk.f32.vlgmr.msra.gmra.mrb[0].mxu1 %vm316_vm0, %v486_v16  ;;  %v487_v26 = vld [vmem:[%s2722_s3 + $0x8] sm:$0xff]  ;;  %v1918_v29 = vpack.c.bf16 %v1791_v28, %v1789_v24  ;;  %v488_v31 = vld [vmem:[%s2722_s3 + $0x10] sm:$0xff]  ;;  %v291_v32 = vld [vmem:[%s2720_s1 + $0x18] sm:$0xff]  ;;  %p2066_p12 = pnand %p2065_p6, %p2732_p11  ;;  %s2070_s20 = scalar_lea.vmem %s2069_s17, 2048 }
  0x43   : > { %1909 = vmatpush1.bf16.msra.mxu0 %v1908_v18  ;;  %1913 = vmatpush1.bf16.msra.mxu1 %v1912_v21  ;;  %v489_v33 = vld [vmem:[%s2722_s3 + $0x18] sm:$0xff]  ;;  %v1768_v34 = vld [vmem:[%s2314_s10 + $0x60] sm:$0xff]  ;;  %v1770_v35 = vld [vmem:[%s2314_s10 + $0x70] sm:$0xff]  ;;  %p2071_p4 = scmp.lt.s32.totalorder %s2589_s12, %s2069_s17  ;;  %p2072_p10 = scmp.lt.s32.totalorder %s2070_s20, %s2064_s13 }
  0x44   : > { %399 = vmatprep.mubr.f32.mxu0 %v2168_v0  ;;  %592 = vmatprep.mubr.f32.mxu1 %v2168_v0  ;;  %v1788_v36 = vld [vmem:[%s2314_s10 + $0x80] sm:$0xff]  ;;  %v1790_v37 = vld [vmem:[%s2314_s10 + $0x90] sm:$0xff]  ;;  %v1809_v40 = vld [vmem:[%s2314_s10 + $0xa8] sm:$0xff]  ;;  %v1916_v47 = vpack.c.bf16 %v1770_v35, %v1768_v34  ;;  %p2067_p13 = pneg %p2066_p12 }
  0x45   : > { %1915 = vmatprep.subr.bf16.mxu0 %v1914_v27  ;;  %1919 = vmatprep.subr.bf16.mxu1 %v1918_v29  ;;  %v292_v38 = vld [vmem:[%s2721_s2] sm:$0xff]  ;;  %v294_v39 = vld [vmem:[%s2721_s2 + $0x10] sm:$0xff]  ;;  %v1811_v41 = vld [vmem:[%s2314_s10 + $0xb8] sm:$0xff]  ;;  %v1920_v48 = vpack.c.bf16 %v1790_v37, %v1788_v36  ;;  %p2073_p1 = por %p2072_p10, %p2071_p4 }
  0x46   : > { %1721 = vmatmul.mubr.msk.f32.gmra.mrb[2].mxu0 %vm316_vm0, %v289_v25  ;;  %1725 = vmatmul.mubr.msk.f32.gmra.mrb[2].mxu1 %vm316_vm0, %v487_v26  ;;  %v1829_v42 = vld [vmem:[%s2314_s10 + $0xc8] sm:$0xff]  ;;  %v1831_v43 = vld [vmem:[%s2314_s10 + $0xd8] sm:$0xff]  ;;  %v1732_v46 = vld [vmem:[%s2722_s3 + $0x20] sm:$0xff]  ;;  %v1922_v49 = vpack.c.bf16 %v1811_v41, %v1809_v40 }
  0x47   : > { %405 = vmatprep.mubr.f32.mxu0 %v2168_v0  ;;  %598 = vmatprep.mubr.f32.mxu1 %v2168_v0  ;;  %v293_v44 = vld [vmem:[%s2721_s2 + $0x8] sm:$0xff]  ;;  %v295_v45 = vld [vmem:[%s2721_s2 + $0x18] sm:$0xff]  ;;  %v1926_v50 = vpack.c.bf16 %v1831_v43, %v1829_v42  ;;  %v482_v52 = vld [vmem:[%s2723_s4] sm:$0xff]  ;;  %p2074_p3 = pnand %p2073_p1, %p2067_p13 }
  0x48   : > { %298 = vperm.xlu0 %2000, %v292_v38   ;;  %308 = vperm.xlu1 %2001, %v294_v39   ;;  %v1733_v51 = vld [vmem:[%s2722_s3 + $0x28] sm:$0xff]  ;;  %v1734_v54 = vld [vmem:[%s2722_s3 + $0x30] sm:$0xff]  ;;  %v485_v56 = vld [vmem:[%s2723_s4 + $0x18] sm:$0xff] }
  0x49   : > { %v483_v53 = vld [vmem:[%s2723_s4 + $0x8] sm:$0xff]  ;;  %v484_v55 = vld [vmem:[%s2723_s4 + $0x10] sm:$0xff]  ;;  %v1735_v57 = vld [vmem:[%s2722_s3 + $0x38] sm:$0xff] }
  0x4a   : > { %1722 = vmatmul.mubr.msk.f32.gmra.mrb[4].mxu0 %vm316_vm0, %v290_v30  ;;  %1726 = vmatmul.mubr.msk.f32.gmra.mrb[4].mxu1 %vm316_vm0, %v488_v31  ;;  %v1808_v58 = vld [vmem:[%s2314_s10 + $0xa0] sm:$0xff]  ;;  %v1810_v59 = vld [vmem:[%s2314_s10 + $0xb0] sm:$0xff]  ;;  %v1849_v62 = vld [vmem:[%s2314_s10 + $0xe8] sm:$0xff] }
  0x4b   : > { %411 = vmatprep.mubr.f32.mxu0 %v2168_v0  ;;  %604 = vmatprep.mubr.f32.mxu1 %v2168_v0  ;;  %v1828_v60 = vld [vmem:[%s2314_s10 + $0xc0] sm:$0xff]  ;;  %v1830_v61 = vld [vmem:[%s2314_s10 + $0xd0] sm:$0xff]  ;;  %v1851_v63 = vld [vmem:[%s2314_s10 + $0xf8] sm:$0xff]  ;;  %v1924_v4 = vpack.c.bf16 %v1810_v59, %v1808_v58 }
  0x4c   : > { %303 = vperm.xlu0 %2000, %v293_v44   ;;  %313 = vperm.xlu1 %2001, %v295_v45   ;;  %v1869_v1 = vld [vmem:[%s2314_s10 + $0x108] sm:$0xff]  ;;  %v1871_v2 = vld [vmem:[%s2314_s10 + $0x118] sm:$0xff]  ;;  %v1792_v3 = vld [vmem:[%s2722_s3 + $0x40] sm:$0xff]  ;;  %v1928_v5 = vpack.c.bf16 %v1830_v61, %v1828_v60  ;;  %v1930_v6 = vpack.c.bf16 %v1851_v63, %v1849_v62 }
  0x4d   : > { %v1934_v7 = vpack.c.bf16 %v1871_v2, %v1869_v1  ;;  %v1793_v8 = vld [vmem:[%s2722_s3 + $0x48] sm:$0xff]  ;;  %v1794_v9 = vld [vmem:[%s2722_s3 + $0x50] sm:$0xff]  ;;  %v1795_v10 = vld [vmem:[%s2722_s3 + $0x58] sm:$0xff] }
  0x4e   : > { %1723 = vmatmul.mubr.msk.f32.gmra.mrb[6].mxu0 %vm316_vm0, %v291_v32  ;;  %1727 = vmatmul.mubr.msk.f32.gmra.mrb[6].mxu1 %vm316_vm0, %v489_v33  ;;  %v1848_v11 = vld [vmem:[%s2314_s10 + $0xe0] sm:$0xff]  ;;  %v1850_v12 = vld [vmem:[%s2314_s10 + $0xf0] sm:$0xff] }
  0x4f   : > { %705 = vmatprep.mubr.f32.mxu0 %v2168_v0  ;;  %824 = vmatprep.mubr.f32.mxu1 %v2168_v0  ;;  %v1868_v13 = vld [vmem:[%s2314_s10 + $0x100] sm:$0xff]  ;;  %v1870_v14 = vld [vmem:[%s2314_s10 + $0x110] sm:$0xff]  ;;  %v1932_v15 = vpack.c.bf16 %v1850_v12, %v1848_v11  ;;  %s1940_s10 = smul.u32 576, %s2310_s29 }
  0x50   : > { %492 = vperm.xlu0 %2000, %v482_v52   ;;  %497 = vperm.xlu1 %2001, %v483_v53   ;;  %v1936_v16 = vpack.c.bf16 %v1870_v14, %v1868_v13 }
  0x51   : > { %s2514_s26 = scalar_lea.vmem [#allocation5], %s1940_s10 }
  0x52   : > { %1736 = vmatmul.mubr.msk.f32.vlgmr.msra.gmra.mrb[8].mxu0 %vm316_vm0, %v1732_v46  ;;  %1756 = vmatmul.mubr.msk.f32.vlgmr.msra.gmra.mrb[8].mxu1 %vm316_vm0, %v1732_v46 }
  0x53   : > { %1917 = vmatpush1.bf16.msra.mxu0 %v1916_v47  ;;  %1921 = vmatpush1.bf16.msra.mxu1 %v1920_v48 }
  0x54   : > { %711 = vmatprep.mubr.f32.mxu0 %v2168_v0  ;;  %830 = vmatprep.mubr.f32.mxu1 %v2168_v0 }
  0x55   : > { %1923 = vmatprep.subr.bf16.mxu0 %v1922_v49  ;;  %1927 = vmatprep.subr.bf16.mxu1 %v1926_v50 }
  0x56   : > { %1737 = vmatmul.mubr.msk.f32.gmra.mrb[10].mxu0 %vm316_vm0, %v1733_v51  ;;  %1757 = vmatmul.mubr.msk.f32.gmra.mrb[10].mxu1 %vm316_vm0, %v1733_v51 }
  0x57   : > { %717 = vmatprep.mubr.f32.mxu0 %v2168_v0  ;;  %836 = vmatprep.mubr.f32.mxu1 %v2168_v0 }
  0x58   : > { %502 = vperm.xlu0 %2000, %v484_v55   ;;  %507 = vperm.xlu1 %2001, %v485_v56  }
  0x5a   : > { %1738 = vmatmul.mubr.msk.f32.gmra.mrb[12].mxu0 %vm316_vm0, %v1734_v54  ;;  %1758 = vmatmul.mubr.msk.f32.gmra.mrb[12].mxu1 %vm316_vm0, %v1734_v54 }
  0x5b   : > { %723 = vmatprep.mubr.f32.mxu0 %v2168_v0  ;;  %842 = vmatprep.mubr.f32.mxu1 %v2168_v0 }
  0x5e   : > { %1739 = vmatmul.mubr.msk.f32.gmra.mrb[14].mxu0 %vm316_vm0, %v1735_v57  ;;  %1759 = vmatmul.mubr.msk.f32.gmra.mrb[14].mxu1 %vm316_vm0, %v1735_v57 }
  0x5f   : > { %943 = vmatprep.mubr.f32.mxu0 %v2168_v0  ;;  %1063 = vmatprep.mubr.f32.mxu1 %v2168_v0 }
  0x62   : > { %1776 = vmatmul.mubr.msk.f32.vlgmr.msra.gmra.mrb[16].mxu0 %vm316_vm0, %v1732_v46  ;;  %1796 = vmatmul.mubr.msk.f32.vlgmr.msra.gmra.mrb[16].mxu1 %vm316_vm0, %v1792_v3 }
  0x63   : > { %1925 = vmatpush1.bf16.msra.mxu0 %v1924_v4  ;;  %1929 = vmatpush1.bf16.msra.mxu1 %v1928_v5 }
  0x64   : > { %949 = vmatprep.mubr.f32.mxu0 %v2168_v0  ;;  %1069 = vmatprep.mubr.f32.mxu1 %v2168_v0 }
  0x65   : > { %1931 = vmatprep.subr.bf16.mxu0 %v1930_v6  ;;  %1935 = vmatprep.subr.bf16.mxu1 %v1934_v7 }
  0x66   : > { %1777 = vmatmul.mubr.msk.f32.gmra.mrb[18].mxu0 %vm316_vm0, %v1733_v51  ;;  %1797 = vmatmul.mubr.msk.f32.gmra.mrb[18].mxu1 %vm316_vm0, %v1793_v8 }
  0x67   : > { %955 = vmatprep.mubr.f32.mxu0 %v2168_v0  ;;  %1075 = vmatprep.mubr.f32.mxu1 %v2168_v0 }
  0x6a   : > { %1778 = vmatmul.mubr.msk.f32.gmra.mrb[20].mxu0 %vm316_vm0, %v1734_v54  ;;  %1798 = vmatmul.mubr.msk.f32.gmra.mrb[20].mxu1 %vm316_vm0, %v1794_v9 }
  0x6b   : > { %961 = vmatprep.mubr.f32.mxu0 %v2168_v0  ;;  %1081 = vmatprep.mubr.f32.mxu1 %v2168_v0 }
  0x6e   : > { %1779 = vmatmul.mubr.msk.f32.gmra.mrb[22].mxu0 %vm316_vm0, %v1735_v57  ;;  %1799 = vmatmul.mubr.msk.f32.gmra.mrb[22].mxu1 %vm316_vm0, %v1795_v10 }
  0x6f   : > { %1182 = vmatprep.mubr.f32.mxu0 %v2168_v0  ;;  %1301 = vmatprep.mubr.f32.mxu1 %v2168_v0 }
  0x72   : > { %1816 = vmatmul.mubr.msk.f32.vlgmr.msra.gmra.mrb[24].mxu0 %vm316_vm0, %v1792_v3  ;;  %1836 = vmatmul.mubr.msk.f32.vlgmr.msra.gmra.mrb[24].mxu1 %vm316_vm0, %v1792_v3 }
  0x73   : > { %1933 = vmatpush1.bf16.msra.mxu0 %v1932_v15  ;;  %1937 = vmatpush1.bf16.msra.mxu1 %v1936_v16 }
  0x74   : > { %1188 = vmatprep.mubr.f32.mxu0 %v2168_v0  ;;  %1307 = vmatprep.mubr.f32.mxu1 %v2168_v0 }
  0x76   : > { %1817 = vmatmul.mubr.msk.f32.gmra.mrb[26].mxu0 %vm316_vm0, %v1793_v8  ;;  %1837 = vmatmul.mubr.msk.f32.gmra.mrb[26].mxu1 %vm316_vm0, %v1793_v8 }
  0x77   : > { %1194 = vmatprep.mubr.f32.mxu0 %v2168_v0  ;;  %1313 = vmatprep.mubr.f32.mxu1 %v2168_v0 }
  0x7a   : > { %1818 = vmatmul.mubr.msk.f32.gmra.mrb[28].mxu0 %vm316_vm0, %v1794_v9  ;;  %1838 = vmatmul.mubr.msk.f32.gmra.mrb[28].mxu1 %vm316_vm0, %v1794_v9 }
  0x7b   : > { %1200 = vmatprep.mubr.f32.mxu0 %v2168_v0  ;;  %1319 = vmatprep.mubr.f32.mxu1 %v2168_v0 }
  0x7e   : > { %1819 = vmatmul.mubr.msk.f32.gmra.mrb[30].mxu0 %vm316_vm0, %v1795_v10  ;;  %1839 = vmatmul.mubr.msk.f32.gmra.mrb[30].mxu1 %vm316_vm0, %v1795_v10 }
  0x7f   : > { %1420 = vmatprep.mubr.f32.mxu0 %v2168_v0  ;;  %1539 = vmatprep.mubr.f32.mxu1 %v2168_v0 }
  0x82   : > { %1856 = vmatmul.mubr.msk.f32.vlgmr.msra.gmra.mrb[32].mxu0 %vm316_vm0, %v1792_v3  ;;  %1876 = vmatmul.mubr.msk.f32.vlgmr.msra.gmra.mrb[32].mxu1 %vm316_vm0, %v1792_v3 }
  0x83   : > { %1426 = vmatprep.mubr.f32.mxu0 %v2168_v0  ;;  %1545 = vmatprep.mubr.f32.mxu1 %v2168_v0 }
  0x86   : > { %1857 = vmatmul.mubr.msk.f32.gmra.mrb[34].mxu0 %vm316_vm0, %v1793_v8  ;;  %1877 = vmatmul.mubr.msk.f32.gmra.mrb[34].mxu1 %vm316_vm0, %v1793_v8 }
  0x87   : > { %1432 = vmatprep.mubr.f32.mxu0 %v2168_v0  ;;  %1551 = vmatprep.mubr.f32.mxu1 %v2168_v0 }
  0x8a   : > { %1858 = vmatmul.mubr.msk.f32.gmra.mrb[36].mxu0 %vm316_vm0, %v1794_v9  ;;  %1878 = vmatmul.mubr.msk.f32.gmra.mrb[36].mxu1 %vm316_vm0, %v1794_v9 }
  0x8b   : > { %1438 = vmatprep.mubr.f32.mxu0 %v2168_v0  ;;  %1557 = vmatprep.mubr.f32.mxu1 %v2168_v0 }
  0x8e   : > { %1859 = vmatmul.mubr.msk.f32.gmra.mrb[38].mxu0 %vm316_vm0, %v1795_v10  ;;  %1879 = vmatmul.mubr.msk.f32.gmra.mrb[38].mxu1 %vm316_vm0, %v1795_v10 }
  0xc7   : > { %v299_v17 = vpop.permute.xlu0 %298  ;;  %v309_v18 = vpop.permute.xlu1 %308 }
  0xcb   : > { %v304_v19 = vpop.permute.xlu0 %303  ;;  %v314_v20 = vpop.permute.xlu1 %313 }
  0xcf   : > { %v493_v21 = vpop.permute.xlu0 %492  ;;  %v498_v29 = vpop.permute.xlu1 %497 }
  0xd7   : > { %v503_v42 = vpop.permute.xlu0 %502  ;;  %v508_v55 = vpop.permute.xlu1 %507 }
 0x115   : > { %v395_v22 = vpop.f32.mrb[0].mxu0  ;;  %v588_v23 = vpop.f32.mrb[0].mxu1 }
 0x116   : > { %v2509_v24 = vadd.f32 %v395_v22, %v299_v17  ;;  %v589_v25 = vadd.f32 %v588_v23, %v493_v21  ;;  %v397_v26 = vpop.f32.mrb[1].mxu0  ;;  %v590_v27 = vpop.f32.mrb[1].mxu1 }
 0x117   : > { %v2511_v28 = vadd.f32 %v397_v26, %v299_v17  ;;  %v591_v0 = vadd.f32 %v590_v27, %v493_v21 }
 0x118   : > { %v418_v30 = vsub.f32 0.0, %v2509_v24  ;;  %611 = vst [vmem:[%s2514_s26] sm:$0xff] %v589_v25 }
 0x119   : > { %v419_v31 = vsub.f32 0.0, %v2511_v28  ;;  %612 = vst [vmem:[%s2514_s26 + $0x8] sm:$0xff] %v591_v0  ;;  %v401_v32 = vpop.f32.mrb[2].mxu0  ;;  %v594_v33 = vpop.f32.mrb[2].mxu1 }
 0x11a   : > { %v426_v34 = vmul.f32 1.442695, %v418_v30  ;;  %v2519_v35 = vadd.f32 %v401_v32, %v304_v19  ;;  %v595_v36 = vadd.f32 %v594_v33, %v498_v29  ;;  %v403_v37 = vpop.f32.mrb[3].mxu0  ;;  %v596_v38 = vpop.f32.mrb[3].mxu1 }
 0x11b   : > { %v428_v39 = vmul.f32 1.442695, %v419_v31  ;;  %v2521_v40 = vadd.f32 %v403_v37, %v304_v19  ;;  %v597_v41 = vadd.f32 %v596_v38, %v498_v29 }
 0x11c   : > { %2002 = vpow2.f32 %v426_v34  ;;  %v420_v43 = vsub.f32 0.0, %v2519_v35  ;;  %613 = vst [vmem:[%s2514_s26 + $0x10] sm:$0xff] %v595_v36 }
 0x11d   : > { %2004 = vpow2.f32 %v428_v39  ;;  %v421_v44 = vsub.f32 0.0, %v2521_v40  ;;  %614 = vst [vmem:[%s2514_s26 + $0x18] sm:$0xff] %v597_v41  ;;  %v407_v45 = vpop.f32.mrb[4].mxu0  ;;  %v600_v46 = vpop.f32.mrb[4].mxu1 }
 0x11e   : > { %v430_v47 = vmul.f32 1.442695, %v420_v43  ;;  %v2527_v48 = vadd.f32 %v407_v45, %v309_v18  ;;  %v601_v49 = vadd.f32 %v600_v46, %v503_v42  ;;  %v409_v50 = vpop.f32.mrb[5].mxu0  ;;  %v602_v51 = vpop.f32.mrb[5].mxu1 }
 0x11f   : > { %v432_v52 = vmul.f32 1.442695, %v421_v44  ;;  %v2529_v53 = vadd.f32 %v409_v50, %v309_v18  ;;  %v603_v54 = vadd.f32 %v602_v51, %v503_v42 }
 0x120   : > { %2006 = vpow2.f32 %v430_v47  ;;  %v422_v56 = vsub.f32 0.0, %v2527_v48  ;;  %615 = vst [vmem:[%s2514_s26 + $0x20] sm:$0xff] %v601_v49 }
 0x121   : > { %2008 = vpow2.f32 %v432_v52  ;;  %v423_v57 = vsub.f32 0.0, %v2529_v53  ;;  %616 = vst [vmem:[%s2514_s26 + $0x28] sm:$0xff] %v603_v54  ;;  %v413_v58 = vpop.f32.mrb[6].mxu0  ;;  %v606_v59 = vpop.f32.mrb[6].mxu1 }
 0x122   : > { %v434_v60 = vmul.f32 1.442695, %v422_v56  ;;  %v2535_v61 = vadd.f32 %v413_v58, %v314_v20  ;;  %v607_v62 = vadd.f32 %v606_v59, %v508_v55  ;;  %v415_v63 = vpop.f32.mrb[7].mxu0  ;;  %v608_v1 = vpop.f32.mrb[7].mxu1 }
 0x123   : > { %v436_v2 = vmul.f32 1.442695, %v423_v57  ;;  %v2537_v3 = vadd.f32 %v415_v63, %v314_v20  ;;  %v609_v4 = vadd.f32 %v608_v1, %v508_v55 }
 0x124   : > { %2010 = vpow2.f32 %v434_v60  ;;  %v424_v5 = vsub.f32 0.0, %v2535_v61  ;;  %617 = vst [vmem:[%s2514_s26 + $0x30] sm:$0xff] %v607_v62 }
 0x125   : > { %2012 = vpow2.f32 %v436_v2  ;;  %v425_v6 = vsub.f32 0.0, %v2537_v3  ;;  %618 = vst [vmem:[%s2514_s26 + $0x38] sm:$0xff] %v609_v4  ;;  %v707_v7 = vpop.f32.mrb[8].mxu0  ;;  %v826_v8 = vpop.f32.mrb[8].mxu1 }
 0x126   : > { %v2003_v9 = vpop.eup %2002  ;;  %v438_v10 = vmul.f32 1.442695, %v424_v5  ;;  %1740 = vst [vmem:[%s2514_s26 + $0x40] sm:$0xff] %v707_v7  ;;  %1760 = vst [vmem:[%s2514_s26 + $0x80] sm:$0xff] %v826_v8  ;;  %v709_v11 = vpop.f32.mrb[9].mxu0 }
 0x127   : > { %v828_v12 = vpop.f32.mrb[9].mxu1  ;;  %v2005_v13 = vpop.eup %2004  ;;  %v442_v14 = vadd.f32 1.0, %v2003_v9  ;;  %v440_v15 = vmul.f32 1.442695, %v425_v6  ;;  %1741 = vst [vmem:[%s2514_s26 + $0x48] sm:$0xff] %v709_v11 }
 0x128   : > { %1761 = vst [vmem:[%s2514_s26 + $0x88] sm:$0xff] %v828_v12  ;;  %v443_v16 = vadd.f32 1.0, %v2005_v13  ;;  %2014 = vpow2.f32 %v438_v10 }
 0x129   : > { %2016 = vrcp.f32 %v442_v14  ;;  %v713_v17 = vpop.f32.mrb[10].mxu0  ;;  %v832_v18 = vpop.f32.mrb[10].mxu1 }
 0x12a   : > { %v2007_v19 = vpop.eup %2006  ;;  %2018 = vrcp.f32 %v443_v16  ;;  %1742 = vst [vmem:[%s2514_s26 + $0x50] sm:$0xff] %v713_v17  ;;  %1762 = vst [vmem:[%s2514_s26 + $0x90] sm:$0xff] %v832_v18  ;;  %v715_v20 = vpop.f32.mrb[11].mxu0 }
 0x12b   : > { %v834_v21 = vpop.f32.mrb[11].mxu1  ;;  %v2009_v22 = vpop.eup %2008  ;;  %v444_v23 = vadd.f32 1.0, %v2007_v19  ;;  %2020 = vpow2.f32 %v440_v15  ;;  %1743 = vst [vmem:[%s2514_s26 + $0x58] sm:$0xff] %v715_v20 }
 0x12c   : > { %1763 = vst [vmem:[%s2514_s26 + $0x98] sm:$0xff] %v834_v21  ;;  %v445_v25 = vadd.f32 1.0, %v2009_v22 }
 0x12d   : > { %2022 = vrcp.f32 %v444_v23  ;;  %v719_v26 = vpop.f32.mrb[12].mxu0  ;;  %v838_v27 = vpop.f32.mrb[12].mxu1 }
 0x12e   : > { %v2011_v0 = vpop.eup %2010  ;;  %2024 = vrcp.f32 %v445_v25  ;;  %1744 = vst [vmem:[%s2514_s26 + $0x60] sm:$0xff] %v719_v26  ;;  %1764 = vst [vmem:[%s2514_s26 + $0xa0] sm:$0xff] %v838_v27  ;;  %v721_v29 = vpop.f32.mrb[13].mxu0 }
 0x12f   : > { %v840_v30 = vpop.f32.mrb[13].mxu1  ;;  %v2013_v31 = vpop.eup %2012  ;;  %v446_v32 = vadd.f32 1.0, %v2011_v0  ;;  %1745 = vst [vmem:[%s2514_s26 + $0x68] sm:$0xff] %v721_v29 }
 0x130   : > { %1765 = vst [vmem:[%s2514_s26 + $0xa8] sm:$0xff] %v840_v30  ;;  %v447_v33 = vadd.f32 1.0, %v2013_v31 }
 0x131   : > { %2026 = vrcp.f32 %v446_v32  ;;  %v725_v34 = vpop.f32.mrb[14].mxu0  ;;  %v844_v36 = vpop.f32.mrb[14].mxu1 }
 0x132   : > { %v2015_v37 = vpop.eup %2014  ;;  %2028 = vrcp.f32 %v447_v33  ;;  %1746 = vst [vmem:[%s2514_s26 + $0x70] sm:$0xff] %v725_v34  ;;  %1766 = vst [vmem:[%s2514_s26 + $0xb0] sm:$0xff] %v844_v36  ;;  %v727_v38 = vpop.f32.mrb[15].mxu0 }
 0x133   : > { %v846_v39 = vpop.f32.mrb[15].mxu1  ;;  %v2017_v41 = vpop.eup %2016  ;;  %v448_v42 = vadd.f32 1.0, %v2015_v37  ;;  %1747 = vst [vmem:[%s2514_s26 + $0x78] sm:$0xff] %v727_v38 }
 0x134   : > { %1767 = vst [vmem:[%s2514_s26 + $0xb8] sm:$0xff] %v846_v39  ;;  %v2019_v43 = vpop.eup %2018  ;;  %v466_v44 = vmul.f32 %v2017_v41, %v2509_v24 }
 0x135   : > { %v2021_v45 = vpop.eup %2020  ;;  %v467_v46 = vmul.f32 %v2019_v43, %v2511_v28  ;;  %2030 = vrcp.f32 %v448_v42  ;;  %v945_v47 = vpop.f32.mrb[16].mxu0 }
 0x136   : > { %v1065_v49 = vpop.f32.mrb[16].mxu1  ;;  %474 = vst [vmem:[%s2562_s11] sm:$0xff] %v466_v44  ;;  %v449_v50 = vadd.f32 1.0, %v2021_v45  ;;  %1780 = vst [vmem:[%s2514_s26 + $0xc0] sm:$0xff] %v945_v47  ;;  %v947_v51 = vpop.f32.mrb[17].mxu0 }
 0x137   : > { %1800 = vst [vmem:[%s2514_s26 + $0x100] sm:$0xff] %v1065_v49  ;;  %v1067_v24 = vpop.f32.mrb[17].mxu1  ;;  %v2023_v52 = vpop.eup %2022  ;;  %475 = vst [vmem:[%s2562_s11 + $0x8] sm:$0xff] %v467_v46 }
 0x138   : > { %1781 = vst [vmem:[%s2514_s26 + $0xc8] sm:$0xff] %v947_v51  ;;  %1801 = vst [vmem:[%s2514_s26 + $0x108] sm:$0xff] %v1067_v24  ;;  %v2025_v28 = vpop.eup %2024  ;;  %v468_v54 = vmul.f32 %v2023_v52, %v2519_v35  ;;  %2032 = vrcp.f32 %v449_v50 }
 0x139   : > { %v469_v55 = vmul.f32 %v2025_v28, %v2521_v40  ;;  %v951_v56 = vpop.f32.mrb[18].mxu0  ;;  %v1071_v57 = vpop.f32.mrb[18].mxu1 }
 0x13a   : > { %476 = vst [vmem:[%s2562_s11 + $0x10] sm:$0xff] %v468_v54  ;;  %1782 = vst [vmem:[%s2514_s26 + $0xd0] sm:$0xff] %v951_v56  ;;  %v953_v58 = vpop.f32.mrb[19].mxu0  ;;  %v1073_v59 = vpop.f32.mrb[19].mxu1 }
 0x13b   : > { %1802 = vst [vmem:[%s2514_s26 + $0x110] sm:$0xff] %v1071_v57  ;;  %v2027_v60 = vpop.eup %2026  ;;  %477 = vst [vmem:[%s2562_s11 + $0x18] sm:$0xff] %v469_v55 }
 0x13c   : > { %1783 = vst [vmem:[%s2514_s26 + $0xd8] sm:$0xff] %v953_v58  ;;  %1803 = vst [vmem:[%s2514_s26 + $0x118] sm:$0xff] %v1073_v59  ;;  %v2029_v35 = vpop.eup %2028  ;;  %v470_v40 = vmul.f32 %v2027_v60, %v2527_v48 }
 0x13d   : > { %v471_v62 = vmul.f32 %v2029_v35, %v2529_v53  ;;  %v957_v63 = vpop.f32.mrb[20].mxu0  ;;  %v1077_v1 = vpop.f32.mrb[20].mxu1 }
 0x13e   : > { %478 = vst [vmem:[%s2562_s11 + $0x20] sm:$0xff] %v470_v40  ;;  %1784 = vst [vmem:[%s2514_s26 + $0xe0] sm:$0xff] %v957_v63  ;;  %v959_v2 = vpop.f32.mrb[21].mxu0  ;;  %v1079_v4 = vpop.f32.mrb[21].mxu1 }
 0x13f   : > { %1804 = vst [vmem:[%s2514_s26 + $0x120] sm:$0xff] %v1077_v1  ;;  %v2031_v5 = vpop.eup %2030  ;;  %479 = vst [vmem:[%s2562_s11 + $0x28] sm:$0xff] %v471_v62 }
 0x140   : > { %1785 = vst [vmem:[%s2514_s26 + $0xe8] sm:$0xff] %v959_v2  ;;  %1805 = vst [vmem:[%s2514_s26 + $0x128] sm:$0xff] %v1079_v4  ;;  %v472_v48 = vmul.f32 %v2031_v5, %v2535_v61 }
 0x141   : > { %v963_v53 = vpop.f32.mrb[22].mxu0  ;;  %v1083_v6 = vpop.f32.mrb[22].mxu1 }
 0x142   : > { %v2033_v7 = vpop.eup %2032  ;;  %480 = vst [vmem:[%s2562_s11 + $0x30] sm:$0xff] %v472_v48  ;;  %1786 = vst [vmem:[%s2514_s26 + $0xf0] sm:$0xff] %v963_v53  ;;  %v965_v8 = vpop.f32.mrb[23].mxu0 }
 0x143   : > { %1806 = vst [vmem:[%s2514_s26 + $0x130] sm:$0xff] %v1083_v6  ;;  %v1085_v9 = vpop.f32.mrb[23].mxu1  ;;  %v473_v10 = vmul.f32 %v2033_v7, %v2537_v3  ;;  %1787 = vst [vmem:[%s2514_s26 + $0xf8] sm:$0xff] %v965_v8 }
 0x144   : > { %1807 = vst [vmem:[%s2514_s26 + $0x138] sm:$0xff] %v1085_v9 }
 0x145   : > { %481 = vst [vmem:[%s2562_s11 + $0x38] sm:$0xff] %v473_v10  ;;  %v1184_v61 = vpop.f32.mrb[24].mxu0  ;;  %v1303_v11 = vpop.f32.mrb[24].mxu1 }
 0x146   : > { %1820 = vst [vmem:[%s2514_s26 + $0x140] sm:$0xff] %v1184_v61  ;;  %1840 = vst [vmem:[%s2514_s26 + $0x180] sm:$0xff] %v1303_v11  ;;  %v1186_v12 = vpop.f32.mrb[25].mxu0  ;;  %v1305_v13 = vpop.f32.mrb[25].mxu1 }
 0x147   : > { %2077 = shalt.err (!%p2074_p3)
}
 0x148   : > { %s2078_s10 = scalar_lea.hbm %s2602_s18, 1024  ;;  %s2082_s15 = scalar_lea.hbm %s2725_s6, 2048 }
 0x149   : > { %p2079_p5 = scmp.ne.s32.totalorder %s2602_s18, %s2078_s10  ;;  %p2083_p9 = scmp.lt.u32.totalorder %s2602_s18, %s2725_s6 }
 0x14a   : > { %p2084_p0 = scmp.lt.u32.totalorder %s2082_s15, %s2078_s10  ;;  %p2086_p6 = scmp.lt.u32.totalorder %s2078_s10, %s2602_s18 }
 0x14b   : > { %p2080_p7 = pnand %p2079_p5, %p2732_p11 }
 0x14c   : > { %p2085_p2 = por %p2084_p0, %p2083_p9 }
 0x14d   : > { %p2081_p8 = pneg %p2080_p7 }
 0x14e   : > { %p2087_p12 = por %p2086_p6, %p2085_p2 }
 0x150   : > { %p2088_p13 = pnand %p2087_p12, %p2081_p8 }
 0x152   : > { %2091 = shalt.err (!%p2088_p13)
}
 0x153   : > { %s2171_s13 = smov 256   ;;  %s2172_s17 = smov 512   ;;  %1821 = vst [vmem:[%s2514_s26 + $0x148] sm:$0xff] %v1186_v12  ;;  %1841 = vst [vmem:[%s2514_s26 + $0x188] sm:$0xff] %v1305_v13  ;;  %v1190_v3 = vpop.f32.mrb[26].mxu0  ;;  %v1309_v14 = vpop.f32.mrb[26].mxu1 }
 0x154   : > { %s2173_s20 = smov 16   ;;  %1822 = vst [vmem:[%s2514_s26 + $0x150] sm:$0xff] %v1190_v3  ;;  %1842 = vst [vmem:[%s2514_s26 + $0x190] sm:$0xff] %v1309_v14  ;;  %v1192_v15 = vpop.f32.mrb[27].mxu0  ;;  %v1311_v16 = vpop.f32.mrb[27].mxu1  ;;  %s2666_s10 = scalar_lea.hbm %s2724_s5, %s1896_s7 }
 0x155   : > { %1944 = dma.vmem_to_hbm [thread:$0]  (%p2732_p11), %s2589_s12, 1024, %s2602_s18, %s1579_s19, %s2171_s13, %s2172_s17, %s2173_s20   ;;  %v1196_v17 = vpop.f32.mrb[28].mxu0  ;;  %v1315_v18 = vpop.f32.mrb[28].mxu1 }
 0x156   : > { %1823 = vst [vmem:[%s2514_s26 + $0x158] sm:$0xff] %v1192_v15  ;;  %1843 = vst [vmem:[%s2514_s26 + $0x198] sm:$0xff] %v1311_v16  ;;  %v1198_v19 = vpop.f32.mrb[29].mxu0  ;;  %v1317_v20 = vpop.f32.mrb[29].mxu1  ;;  %s1592_s12 = sshll.u32 %s2514_s26, 4  ;;  %s1574_s28 = scalar_lea.sflag [#allocation4], %s2310_s29  ;;  %s2668_s12 = int_to_ptr.vmem [resolvable:$true] %s1592_s12 }
 0x157   : > { %1824 = vst [vmem:[%s2514_s26 + $0x160] sm:$0xff] %v1196_v17  ;;  %1844 = vst [vmem:[%s2514_s26 + $0x1a0] sm:$0xff] %v1315_v18  ;;  %v1202_v21 = vpop.f32.mrb[30].mxu0  ;;  %v1321_v22 = vpop.f32.mrb[30].mxu1  ;;  %s2092_s11 = scalar_lea.vmem %s2668_s12, 9216  ;;  %s2174_s25 = smov [#allocation5]  }
 0x158   : > { %1825 = vst [vmem:[%s2514_s26 + $0x168] sm:$0xff] %v1198_v19  ;;  %1845 = vst [vmem:[%s2514_s26 + $0x1a8] sm:$0xff] %v1317_v20  ;;  %v1204_v23 = vpop.f32.mrb[31].mxu0  ;;  %v1323_v25 = vpop.f32.mrb[31].mxu1  ;;  %p2093_p4 = scmp.ne.s32.totalorder %s2668_s12, %s2092_s11  ;;  %s2096_s7 = sshll.u32 %s2174_s25, 4  ;;  %s2097_s7 = int_to_ptr.vmem [resolvable:$false] %s2096_s7 }
 0x159   : > { %1826 = vst [vmem:[%s2514_s26 + $0x170] sm:$0xff] %v1202_v21  ;;  %1846 = vst [vmem:[%s2514_s26 + $0x1b0] sm:$0xff] %v1321_v22  ;;  %v1422_v26 = vpop.f32.mrb[32].mxu0  ;;  %v1541_v27 = vpop.f32.mrb[32].mxu1  ;;  %s2098_s15 = scalar_lea.vmem %s2097_s7, 18432  ;;  %p2099_p3 = scmp.lt.s32.totalorder %s2668_s12, %s2097_s7 }
 0x15a   : > { %1827 = vst [vmem:[%s2514_s26 + $0x178] sm:$0xff] %v1204_v23  ;;  %1847 = vst [vmem:[%s2514_s26 + $0x1b8] sm:$0xff] %v1323_v25  ;;  %v1424_v0 = vpop.f32.mrb[33].mxu0  ;;  %v1543_v29 = vpop.f32.mrb[33].mxu1  ;;  %p2094_p10 = pnand %p2093_p4, %p2732_p11  ;;  %p2100_p5 = scmp.lt.s32.totalorder %s2098_s15, %s2092_s11 }
 0x15b   : > { %1860 = vst [vmem:[%s2514_s26 + $0x1c0] sm:$0xff] %v1422_v26  ;;  %1880 = vst [vmem:[%s2514_s26 + $0x200] sm:$0xff] %v1541_v27  ;;  %v1428_v30 = vpop.f32.mrb[34].mxu0  ;;  %v1547_v31 = vpop.f32.mrb[34].mxu1 }
 0x15c   : > { %1861 = vst [vmem:[%s2514_s26 + $0x1c8] sm:$0xff] %v1424_v0  ;;  %1881 = vst [vmem:[%s2514_s26 + $0x208] sm:$0xff] %v1543_v29  ;;  %v1430_v32 = vpop.f32.mrb[35].mxu0  ;;  %v1549_v33 = vpop.f32.mrb[35].mxu1  ;;  %p2095_p1 = pneg %p2094_p10  ;;  %p2101_p7 = por %p2100_p5, %p2099_p3 }
 0x15d   : > { %1862 = vst [vmem:[%s2514_s26 + $0x1d0] sm:$0xff] %v1428_v30  ;;  %1882 = vst [vmem:[%s2514_s26 + $0x210] sm:$0xff] %v1547_v31  ;;  %v1434_v34 = vpop.f32.mrb[36].mxu0  ;;  %v1553_v36 = vpop.f32.mrb[36].mxu1 }
 0x15e   : > { %1863 = vst [vmem:[%s2514_s26 + $0x1d8] sm:$0xff] %v1430_v32  ;;  %1883 = vst [vmem:[%s2514_s26 + $0x218] sm:$0xff] %v1549_v33  ;;  %v1436_v37 = vpop.f32.mrb[37].mxu0  ;;  %v1555_v38 = vpop.f32.mrb[37].mxu1  ;;  %p2102_p8 = pnand %p2101_p7, %p2095_p1 }
 0x15f   : > { %1864 = vst [vmem:[%s2514_s26 + $0x1e0] sm:$0xff] %v1434_v34  ;;  %1884 = vst [vmem:[%s2514_s26 + $0x220] sm:$0xff] %v1553_v36 }
 0x160   : > { %1865 = vst [vmem:[%s2514_s26 + $0x1e8] sm:$0xff] %v1436_v37  ;;  %1885 = vst [vmem:[%s2514_s26 + $0x228] sm:$0xff] %v1555_v38 }
 0x161   : > { %v1440_v39 = vpop.f32.mrb[38].mxu0  ;;  %v1559_v41 = vpop.f32.mrb[38].mxu1 }
 0x162   : > { %1866 = vst [vmem:[%s2514_s26 + $0x1f0] sm:$0xff] %v1440_v39  ;;  %1886 = vst [vmem:[%s2514_s26 + $0x230] sm:$0xff] %v1559_v41  ;;  %v1442_v42 = vpop.f32.mrb[39].mxu0  ;;  %v1561_v43 = vpop.f32.mrb[39].mxu1 }
 0x163   : > { %1867 = vst [vmem:[%s2514_s26 + $0x1f8] sm:$0xff] %v1442_v42  ;;  %1887 = vst [vmem:[%s2514_s26 + $0x238] sm:$0xff] %v1561_v43 }
 0x164   : > { %2105 = shalt.err (!%p2102_p8)
}
 0x165   : > { %s2106_s26 = scalar_lea.hbm %s2666_s10, 9216  ;;  %s2110_s18 = scalar_lea.hbm %s2724_s5, 18432 }
 0x166   : > { %p2107_p9 = scmp.ne.s32.totalorder %s2666_s10, %s2106_s26  ;;  %p2111_p6 = scmp.lt.u32.totalorder %s2666_s10, %s2724_s5 }
 0x167   : > { %p2112_p12 = scmp.lt.u32.totalorder %s2110_s18, %s2106_s26  ;;  %p2114_p4 = scmp.lt.u32.totalorder %s2106_s26, %s2666_s10 }
 0x168   : > { %p2108_p0 = pnand %p2107_p9, %p2732_p11 }
 0x169   : > { %p2113_p13 = por %p2112_p12, %p2111_p6 }
 0x16a   : > { %p2109_p2 = pneg %p2108_p0 }
 0x16b   : > { %p2115_p10 = por %p2114_p4, %p2113_p13 }
 0x16d   : > { %p2116_p1 = pnand %p2115_p10, %p2109_p2 }
 0x16f   : > { %2119 = shalt.err (!%p2116_p1)
}
 0x170   : > { %1943 = dma.vmem_to_hbm [thread:$0]  (%p2732_p11), %s2668_s12, 9216, %s2666_s10, %s1574_s28, %s2171_s13, %s2172_s17, %s2173_s20  }
 0x171 PF: > { %s1623_s11 = sand.u32 1, %s2150_s21   ;;  %p2733_p3 = scmp.ne.s32.totalorder %s2729_s9, 0 }
 0x172   : > { %p2734_p5 = scmp.ge.s32.totalorder %s2162_s24, 2  ;;  %s1624_s7 = scalar_lea.sflag [#allocation4], %s1623_s11 }
 0x174   : > { %p1952_p7 = pnand %p2734_p5, %p2733_p3 }
 0x176   : > { %2141 = dma.done.wait (!%p1952_p7), %s1624_s7, 9216  }
 0x177   : > { %2143 = vsyncadd (!%p1952_p7), %s1624_s7, 4294958080  ;;  %s1633_s8 = scalar_lea.sflag [#allocation7], %s1623_s11 }
 0x178   : > { %2145 = dma.done.wait (!%p1952_p7), %s1633_s8, 1024  }
 0x179   : > { %2147 = vsyncadd (!%p1952_p7), %s1633_s8, 4294966272  ;;  %p23_p11 = scmp.ge.s32.totalorder %s2235_s27, 4   ;;  %s2735_s21 = smov %s2154_s22 }
 0x17a   : > { %s2736_s22 = smov %s2158_s23  ;;  %s2737_s23 = smov %s2247_s30 }
 0x17b   : > { %s2738_s24 = smov %s2235_s27  ;;  %25 = sbr.rel (!%p23_p11) target bundleno = 7 (0x7), region = 120 }
 0x182   :  { %1638 = vsyncpa [#allocation3], 1 }
 0x183   :  { %1640 = vsyncpa [#allocation3 + $0x1], 1 }
 0x184   :  { %1641 = vsyncpa [#allocation4], 1 }
 0x185   :  { %1643 = vsyncpa [#allocation4 + $0x1], 1 }
 0x186   :  { %1644 = vsyncpa [#allocation7], 1 }
 0x187   :  { %1646 = vsyncpa [#allocation7 + $0x1], 1 }

</bundles_post_ra>
